<compile_context>
chip_gen: v7x
topology: tpu7x:2x2x1
jax: 0.10.0
libtpu: 0.0.40
codegen_flags: <defaults>
</compile_context>

<pallas_src>
import functools
import math

import jax
import jax.numpy as jnp
from jax.experimental import pallas as pl
from jax.experimental.pallas import tpu as pltpu


def _gelu_tanh(x):
    # PyTorch F.gelu(x, approximate='tanh')
    c = math.sqrt(2.0 / math.pi)
    return 0.5 * x * (1.0 + jnp.tanh(c * (x + 0.044715 * x * x * x)))


def _round_up(x, m):
    return ((x + m - 1) // m) * m


def mlp_kernel(x_ref, w13_ref, b13_ref, w2_ref, b2_ref, o_ref, acc_ref, *, tn):
    k = pl.program_id(1)

    @pl.when(k == 0)
    def _():
        acc_ref[...] = jnp.zeros_like(acc_ref)

    x = x_ref[...]                                   # native dtype (bf16/f32)
    # Fused first stage: one [tm, dim] @ [dim, 2*tn] matmul, f32 accumulation.
    h = jnp.dot(x, w13_ref[...], preferred_element_type=jnp.float32)
    h = h + b13_ref[...].astype(jnp.float32)
    h1 = h[:, :tn]
    h3 = h[:, tn:]
    gated = _gelu_tanh(h1) * h3                      # f32 epilogue

    acc_ref[...] += jnp.dot(
        gated.astype(w2_ref.dtype), w2_ref[...], preferred_element_type=jnp.float32
    )

    @pl.when(k == pl.num_programs(1) - 1)
    def _():
        o_ref[...] = (acc_ref[...] + b2_ref[...].astype(jnp.float32)).astype(o_ref.dtype)


def mlp_pallas(x, w1, b1, w2, b2, w3, b3, *, tm=256, tn=512):
    """x: [N, dim]; w1,w3: [dim, inter]; w2: [inter, dim]; biases [1, out]."""
    N, dim = x.shape
    inter = w1.shape[1]

    # Effective tiles (shrink for small problems, keep sublane alignment).
    tm = min(tm, _round_up(N, 8))
    tn = min(tn, inter)

    # Pad rows so the grid covers N without a special last tile.
    n_pad = _round_up(N, tm)
    if n_pad != N:
        x = jnp.pad(x, ((0, n_pad - N), (0, 0)))

    # Pad the intermediate dim to a multiple of tn; padded w2 rows are zero, so
    # the padded columns contribute nothing to the output.
    inter_pad = _round_up(inter, tn)
    if inter_pad != inter:
        p = inter_pad - inter
        w1 = jnp.pad(w1, ((0, 0), (0, p)))
        w3 = jnp.pad(w3, ((0, 0), (0, p)))
        b1 = jnp.pad(b1, ((0, 0), (0, p)))
        b3 = jnp.pad(b3, ((0, 0), (0, p)))
        w2 = jnp.pad(w2, ((0, p), (0, 0)))

    nk = inter_pad // tn
    # Per-tile fusion: block k of w13 holds [w1[:, k*tn:(k+1)*tn] | w3[:, ...]].
    w13 = jnp.concatenate(
        [w1.reshape(dim, nk, tn), w3.reshape(dim, nk, tn)], axis=2
    ).reshape(dim, 2 * inter_pad)
    b13 = jnp.concatenate(
        [b1.reshape(1, nk, tn), b3.reshape(1, nk, tn)], axis=2
    ).reshape(1, 2 * inter_pad)

    grid = (n_pad // tm, nk)

    # VMEM budget estimate: double-buffered input/output tiles + f32 accumulator.
    bpe_x = jnp.dtype(x.dtype).itemsize
    bpe_w = jnp.dtype(w13.dtype).itemsize
    tile_bytes = (
        tm * dim * bpe_x          # x tile
        + dim * 2 * tn * bpe_w    # w13 tile
        + 2 * tn * bpe_w          # b13 tile
        + tn * dim * bpe_w        # w2 tile
        + dim * bpe_w             # b2
        + tm * dim * bpe_x        # out tile
    )
    vmem_limit = 2 * tile_bytes + tm * dim * 4 + (4 << 20)
    vmem_limit = max(vmem_limit, 32 << 20)
    vmem_limit = min(vmem_limit, 64 << 20)   # safe even on v7x (64 MiB VMEM)

    kernel = functools.partial(mlp_kernel, tn=tn)

    out = pl.pallas_call(
        kernel,
        out_shape=jax.ShapeDtypeStruct((n_pad, dim), x.dtype),
        grid_spec=pltpu.PrefetchScalarGridSpec(
            num_scalar_prefetch=0,
            grid=grid,
            in_specs=[
                pl.BlockSpec((tm, dim), lambda i, k: (i, 0)),       # x rows tile
                pl.BlockSpec((dim, 2 * tn), lambda i, k: (0, k)),   # fused w1|w3 tile
                pl.BlockSpec((1, 2 * tn), lambda i, k: (0, k)),     # fused b1|b3 tile
                pl.BlockSpec((tn, dim), lambda i, k: (k, 0)),       # w2 row tile
                pl.BlockSpec((1, dim), lambda i, k: (0, 0)),        # b2
            ],
            out_specs=pl.BlockSpec((tm, dim), lambda i, k: (i, 0)),
            scratch_shapes=[pltpu.VMEM((tm, dim), jnp.float32)],    # f32 accumulator
        ),
        compiler_params=pltpu.CompilerParams(
            dimension_semantics=("parallel", "arbitrary"),
            vmem_limit_bytes=int(vmem_limit),
        ),
    )(x, w13, b13, w2, b2)

    return out[:N]


def init_params(key, dim, inter_dim, dtype=jnp.float32):
    """Deterministic init mirroring nn.Linear's U(-1/sqrt(fan_in), 1/sqrt(fan_in)).
    Weights returned already transposed to [in, out]."""
    ks = jax.random.split(key, 6)

    def lin(kw, kb, fan_in, fan_out):
        bound = 1.0 / math.sqrt(fan_in)
        w = jax.random.uniform(kw, (fan_in, fan_out), dtype, -bound, bound)
        b = jax.random.uniform(kb, (1, fan_out), dtype, -bound, bound)
        return w, b

    w1, b1 = lin(ks[0], ks[1], dim, inter_dim)
    w2, b2 = lin(ks[2], ks[3], inter_dim, dim)
    w3, b3 = lin(ks[4], ks[5], dim, inter_dim)
    return w1, b1, w2, b2, w3, b3


def mlp_ref(x, w1, b1, w2, b2, w3, b3):
    h1 = x @ w1 + b1
    h3 = x @ w3 + b3
    return (_gelu_tanh(h1) * h3) @ w2 + b2


if __name__ == "__main__":
    key = jax.random.PRNGKey(0)
    batch, seq, dim, inter_dim = 2, 8, 32, 64

    kx, kp = jax.random.split(key)
    x = jax.random.normal(kx, (batch, seq, dim), jnp.float32)
    params = init_params(kp, dim, inter_dim)

    x2d = x.reshape(batch * seq, dim)        # flatten leading dims like nn.Linear
    y2d = mlp_pallas(x2d, *params)
    y = y2d.reshape(batch, seq, dim)
    jax.block_until_ready(y)

    # correctness check against pure-JAX reference
    y_ref = mlp_ref(x2d, *params).reshape(batch, seq, dim)
    assert jnp.allclose(y, y_ref, atol=1e-5, rtol=1e-5), "mismatch vs reference"

    print("KERNEL_OK")
</pallas_src>

<mosaic_0001>
module attributes {stable_mosaic.version = 11 : i64} {
  func.func @mlp_kernel(%arg0: i32, %arg1: i32, %arg2: memref<16x32xf32, #tpu.memory_space<vmem>>, %arg3: memref<32x128xf32, #tpu.memory_space<vmem>>, %arg4: memref<1x128xf32, #tpu.memory_space<vmem>>, %arg5: memref<64x32xf32, #tpu.memory_space<vmem>>, %arg6: memref<1x32xf32, #tpu.memory_space<vmem>>, %arg7: memref<16x32xf32, #tpu.memory_space<vmem>>, %arg8: memref<16x32xf32, #tpu.memory_space<vmem>>) attributes {dimension_semantics = [#tpu.dimension_semantics<parallel>, #tpu.dimension_semantics<arbitrary>], iteration_bounds = array<i64: 1, 1>, scalar_prefetch = 0 : i64, scratch_operands = 1 : i64, tpu.core_type = #tpu.core_type<tc>, window_params = [{transform_indices = @transform_0, window_bounds = array<i64: 16, 32>}, {transform_indices = @transform_1, window_bounds = array<i64: 32, 128>}, {transform_indices = @transform_2, window_bounds = array<i64: 1, 128>}, {transform_indices = @transform_3, window_bounds = array<i64: 64, 32>}, {pipeline_mode = #tpu.pipeline_mode<synchronous>, transform_indices = @transform_4, window_bounds = array<i64: 1, 32>}, {transform_indices = @transform_5, window_bounds = array<i64: 16, 32>}]} {
    %c0_i32 = arith.constant 0 : i32
    %0 = arith.cmpi eq, %arg1, %c0_i32 : i32
    %1 = arith.extui %0 : i1 to i32
    %c0_i32_0 = arith.constant 0 : i32
    %2 = arith.cmpi ne, %1, %c0_i32_0 : i32
    scf.if %2 {
      %cst_19 = arith.constant 0.000000e+00 : f32
      %33 = vector.broadcast %cst_19 : f32 to vector<16x32xf32>
      %c0_20 = arith.constant 0 : index
      %c0_21 = arith.constant 0 : index
      %34 = vector.load %arg8[%c0_20, %c0_21] : memref<16x32xf32, #tpu.memory_space<vmem>>, vector<16x32xf32>
      tpu.vector_store %arg8[%c0_20, %c0_21], %33 {strides = array<i32>} : memref<16x32xf32, #tpu.memory_space<vmem>>, vector<16x32xf32>,
    } else {
    }
    %c0 = arith.constant 0 : index
    %c0_1 = arith.constant 0 : index
    %3 = vector.load %arg2[%c0, %c0_1] : memref<16x32xf32, #tpu.memory_space<vmem>>, vector<16x32xf32>
    %c0_2 = arith.constant 0 : index
    %c0_3 = arith.constant 0 : index
    %4 = vector.load %arg3[%c0_2, %c0_3] : memref<32x128xf32, #tpu.memory_space<vmem>>, vector<32x128xf32>
    %cst = arith.constant dense<0.000000e+00> : vector<16x128xf32>
    %5 = tpu.matmul %3, %4, %cst {dimension_numbers = #tpu.dot_dimension_numbers<[1], [0], [0], [1], [0, 0, 1, 1], [], []>} : vector<16x32xf32>, vector<32x128xf32>, vector<16x128xf32> -> vector<16x128xf32>
    %c0_4 = arith.constant 0 : index
    %c0_5 = arith.constant 0 : index
    %6 = vector.load %arg4[%c0_4, %c0_5] : memref<1x128xf32, #tpu.memory_space<vmem>>, vector<1x128xf32>
    %7 = vector.broadcast %6 : vector<1x128xf32> to vector<16x128xf32>
    %8 = arith.addf %5, %7 : vector<16x128xf32>
    %9 = vector.extract_strided_slice %8 {offsets = [0, 0], sizes = [16, 64], strides = [1, 1]} : vector<16x128xf32> to vector<16x64xf32>
    %10 = vector.extract_strided_slice %8 {offsets = [0, 64], sizes = [16, 64], strides = [1, 1]} : vector<16x128xf32> to vector<16x64xf32>
    %cst_6 = arith.constant 5.000000e-01 : f32
    %11 = vector.broadcast %cst_6 : f32 to vector<16x64xf32>
    %12 = arith.mulf %11, %9 : vector<16x64xf32>
    %cst_7 = arith.constant 4.471500e-02 : f32
    %13 = vector.broadcast %cst_7 : f32 to vector<16x64xf32>
    %14 = arith.mulf %13, %9 : vector<16x64xf32>
    %15 = arith.mulf %14, %9 : vector<16x64xf32>
    %16 = arith.mulf %15, %9 : vector<16x64xf32>
    %17 = arith.addf %9, %16 : vector<16x64xf32>
    %cst_8 = arith.constant 0.797884583 : f32
    %18 = vector.broadcast %cst_8 : f32 to vector<16x64xf32>
    %19 = arith.mulf %18, %17 : vector<16x64xf32>
    %20 = math.tanh %19 : vector<16x64xf32>
    %cst_9 = arith.constant 1.000000e+00 : f32
    %21 = vector.broadcast %cst_9 : f32 to vector<16x64xf32>
    %22 = arith.addf %21, %20 : vector<16x64xf32>
    %23 = arith.mulf %12, %22 : vector<16x64xf32>
    %24 = arith.mulf %23, %10 : vector<16x64xf32>
    %c0_10 = arith.constant 0 : index
    %c0_11 = arith.constant 0 : index
    %25 = vector.load %arg8[%c0_10, %c0_11] : memref<16x32xf32, #tpu.memory_space<vmem>>, vector<16x32xf32>
    %c0_12 = arith.constant 0 : index
    %c0_13 = arith.constant 0 : index
    %26 = vector.load %arg5[%c0_12, %c0_13] : memref<64x32xf32, #tpu.memory_space<vmem>>, vector<64x32xf32>
    %cst_14 = arith.constant dense<0.000000e+00> : vector<16x32xf32>
    %27 = tpu.matmul %24, %26, %cst_14 {dimension_numbers = #tpu.dot_dimension_numbers<[1], [0], [0], [1], [0, 0, 1, 1], [], []>} : vector<16x64xf32>, vector<64x32xf32>, vector<16x32xf32> -> vector<16x32xf32>
    %28 = arith.addf %25, %27 : vector<16x32xf32>
    %c0_15 = arith.constant 0 : index
    %c0_16 = arith.constant 0 : index
    %29 = vector.load %arg8[%c0_15, %c0_16] : memref<16x32xf32, #tpu.memory_space<vmem>>, vector<16x32xf32>
    tpu.vector_store %arg8[%c0_15, %c0_16], %28 {strides = array<i32>} : memref<16x32xf32, #tpu.memory_space<vmem>>, vector<16x32xf32>,
    %c0_i32_17 = arith.constant 0 : i32
    %30 = arith.cmpi eq, %arg1, %c0_i32_17 : i32
    %31 = arith.extui %30 : i1 to i32
    %c0_i32_18 = arith.constant 0 : i32
    %32 = arith.cmpi ne, %31, %c0_i32_18 : i32
    scf.if %32 {
      %c0_19 = arith.constant 0 : index
      %c0_20 = arith.constant 0 : index
      %33 = vector.load %arg8[%c0_19, %c0_20] : memref<16x32xf32, #tpu.memory_space<vmem>>, vector<16x32xf32>
      %c0_21 = arith.constant 0 : index
      %c0_22 = arith.constant 0 : index
      %34 = vector.load %arg6[%c0_21, %c0_22] : memref<1x32xf32, #tpu.memory_space<vmem>>, vector<1x32xf32>
      %35 = vector.broadcast %34 : vector<1x32xf32> to vector<16x32xf32>
      %36 = arith.addf %33, %35 : vector<16x32xf32>
      %c0_23 = arith.constant 0 : index
      %c0_24 = arith.constant 0 : index
      %37 = vector.load %arg7[%c0_23, %c0_24] : memref<16x32xf32, #tpu.memory_space<vmem>>, vector<16x32xf32>
      tpu.vector_store %arg7[%c0_23, %c0_24], %36 {strides = array<i32>} : memref<16x32xf32, #tpu.memory_space<vmem>>, vector<16x32xf32>,
    } else {
    }
    return
  }
  func.func @transform_0(%arg0: i32, %arg1: i32) -> (i32, i32) {
    %c0_i32 = arith.constant 0 : i32
    %c0_i32_0 = arith.constant 0 : i32
    return %arg0, %c0_i32 : i32, i32
  }
  func.func @transform_1(%arg0: i32, %arg1: i32) -> (i32, i32) {
    %c0_i32 = arith.constant 0 : i32
    %c0_i32_0 = arith.constant 0 : i32
    return %c0_i32, %arg1 : i32, i32
  }
  func.func @transform_2(%arg0: i32, %arg1: i32) -> (i32, i32) {
    %c0_i32 = arith.constant 0 : i32
    %c0_i32_0 = arith.constant 0 : i32
    return %c0_i32, %arg1 : i32, i32
  }
  func.func @transform_3(%arg0: i32, %arg1: i32) -> (i32, i32) {
    %c0_i32 = arith.constant 0 : i32
    %c0_i32_0 = arith.constant 0 : i32
    return %arg1, %c0_i32 : i32, i32
  }
  func.func @transform_4(%arg0: i32, %arg1: i32) -> (i32, i32) {
    %c0_i32 = arith.constant 0 : i32
    %c0_i32_0 = arith.constant 0 : i32
    %c0_i32_1 = arith.constant 0 : i32
    return %c0_i32, %c0_i32_0 : i32, i32
  }
  func.func @transform_5(%arg0: i32, %arg1: i32) -> (i32, i32) {
    %c0_i32 = arith.constant 0 : i32
    %c0_i32_0 = arith.constant 0 : i32
    return %arg0, %c0_i32 : i32, i32
  }
}

</mosaic_0001>

<bundles_post_ra>
// kernel: tpu_custom_call.1
= control target key start
LH: loop header
LB: loop body
LE: loop exit
PB: predicated region body
PF: predicated region fallthrough
CT: control target
= control target key end

     0   :  { %vm25_vm0 = vcmask 261120   ;;  %s491_s0 = inlined_call_operand.vmem [shape: f32[16,32], index: 0, kind: input, shape index: {}]   ;;  %s492_s1 = inlined_call_operand.vmem [shape: f32[32,128], index: 1, kind: input, shape index: {}]   ;;  %s493_s2 = inlined_call_operand.vmem [shape: f32[1,128], index: 2, kind: input, shape index: {}]   ;;  %s494_s3 = inlined_call_operand.vmem [shape: f32[64,32], index: 3, kind: input, shape index: {}]   ;;  %s495_s4 = inlined_call_operand.vmem [shape: f32[1,32], index: 4, kind: input, shape index: {}]   ;;  %s496_s5 = inlined_call_operand.hbm [shape: f32[16,32], index: 5, kind: output, shape index: {}]  }
   0x1   :  { %v30_v0 = vld [vmem:[%s492_s1] sm:$0xff]  ;;  %v31_v1 = vld [vmem:[%s492_s1 + $0x8] sm:$0xff]  ;;  %v32_v2 = vld [vmem:[%s492_s1 + $0x10] sm:$0xff] }
   0x2   :  { %v331_v3 = vpack.c.bf16 %v31_v1, %v30_v0  ;;  %v33_v4 = vld [vmem:[%s492_s1 + $0x18] sm:$0xff]  ;;  %v28_v5 = vld [vmem:[%s491_s0] sm:$0xff] }
   0x3   :  { %v335_v6 = vpack.c.bf16 %v33_v4, %v32_v2  ;;  %309 = vmatprep.mubr.msk.f32.mxu0 %vm25_vm0, %v28_v5 }
   0x4   :  { %10 = vsyncpa [#allocation4], 0  ;;  %332 = vmatprep.subr.bf16.mxu0 %v331_v3  ;;  %v29_v7 = vld [vmem:[%s491_s0 + $0x8] sm:$0xff]  ;;  %v153_v8 = vld [vmem:[%s494_s3] sm:$0xff]  ;;  %v388_v20 = vmov 0.0   ;;  %s389_s21 = smov 64  }
   0x5   :  { %334 = vmatpush3.bf16.msra.mxu0 %v331_v3  ;;  %v154_v9 = vld [vmem:[%s494_s3 + $0x8] sm:$0xff]  ;;  %v155_v10 = vld [vmem:[%s494_s3 + $0x10] sm:$0xff]  ;;  %v156_v12 = vld [vmem:[%s494_s3 + $0x18] sm:$0xff]  ;;  %27 = vst.msk [vmem:[#allocation2 + $0x8] sm:$0xff] %vm25_vm0, %v388_v20  ;;  %vm161_vm1 = vcmask 523264   ;;  %s390_s22 = smov [#allocation3]  }
   0x6   :  { %336 = vmatprep.subr.bf16.mxu0 %v335_v6  ;;  %v339_v11 = vpack.c.bf16 %v154_v9, %v153_v8  ;;  %v343_v13 = vpack.c.bf16 %v156_v12, %v155_v10  ;;  %v157_v14 = vld [vmem:[%s494_s3 + $0x20] sm:$0xff]  ;;  %v158_v15 = vld [vmem:[%s494_s3 + $0x28] sm:$0xff]  ;;  %v159_v17 = vld [vmem:[%s494_s3 + $0x30] sm:$0xff]  ;;  %26 = vst.msk [vmem:[#allocation2] sm:$0xff] %vm25_vm0, %v388_v20  ;;  %s268_s23 = sshll.u32 %s390_s22, 4  ;;  %s269_s23 = int_to_ptr.vmem [resolvable:$true] %s268_s23 }
   0x7   :  { %v347_v16 = vpack.c.bf16 %v158_v15, %v157_v14  ;;  %v160_v18 = vld [vmem:[%s494_s3 + $0x38] sm:$0xff]  ;;  %v279_v21 = vld [vmem:[%s493_s2] ss:$0 sm:$0xff]  ;;  %s364_s24 = scalar_lea.vmem %s269_s23, 256  ;;  %p369_p1 = scmp.lt.s32.totalorder %s269_s23, %s269_s23 }
   0x8   :  { %340 = vmatprep.subr.bf16.mxu1 %v339_v11  ;;  %v351_v19 = vpack.c.bf16 %v160_v18, %v159_v17  ;;  %v284_v54 = vld [vmem:[%s495_s4] ss:$0 sm:$0xff]  ;;  %p365_p0 = scmp.ne.s32.totalorder %s269_s23, %s364_s24  ;;  %p370_p2 = scmp.lt.s32.totalorder %s364_s24, %s364_s24 }
   0x9   :  { %338 = vmatpush3.bf16.msra.mxu0 %v335_v6  ;;  %342 = vmatpush3.bf16.msra.mxu1 %v339_v11 }
   0xa   :  { %344 = vmatprep.subr.bf16.mxu1 %v343_v13  ;;  %p371_p3 = por %p370_p2, %p369_p1 }
   0xc   :  { %310 = vmatmul.mubr.msk.f32.vlgmr.msra.gmra.mrb[0].mxu0 %vm25_vm0, %v29_v7  ;;  %v152_v48 = vld [vmem:[#allocation2 + $0x8] sm:$0xff]  ;;  %p372_p4 = pnand %p371_p3, %p365_p0 }
   0xd   :  { %346 = vmatpush3.bf16.msra.mxu1 %v343_v13  ;;  %v151_v49 = vld [vmem:[#allocation2] sm:$0xff] }
   0xe   :  { %348 = vmatprep.subr.bf16.mxu1 %v347_v16 }
  0x11   :  { %350 = vmatpush3.bf16.msra.mxu1 %v347_v16 }
  0x12   :  { %352 = vmatprep.subr.bf16.mxu1 %v351_v19 }
  0x15   :  { %354 = vmatpush3.bf16.msra.mxu1 %v351_v19 }
  0xdf   :  { %v311_v22 = vpop.f32.mrb[0].mxu0 }
  0xe0   :  { %v114_v23 = vpop.f32.mrb[1].mxu0  ;;  %v120_v25 = vadd.f32 %v311_v22, %v279_v21 }
  0xe1   :  { %v115_v24 = vadd.f32 %v279_v21, %v114_v23 }
  0xe2   :  { %v126_v28 = vmul.f32 0.044715, %v120_v25  ;;  %v124_v44 = vmul.f32 0.5, %v120_v25 }
  0xe3   :  { %143 = vrot.lane.b32.xlu0 %v115_v24, %s389_s21  ;;  %v125_v26 = vmul.f32 0.044715, %v115_v24  ;;  %v123_v39 = vmul.f32 0.5, %v115_v24 }
  0xe4   :  { %v128_v30 = vmul.f32 %v126_v28, %v120_v25 }
  0xe5   :  { %v127_v27 = vmul.f32 %v125_v26, %v115_v24 }
  0xe6   :  { %v130_v32 = vmul.f32 %v128_v30, %v120_v25 }
  0xe7   :  { %145 = vrot.lane.b32.xlu0 %v120_v25, %s389_s21  ;;  %v129_v29 = vmul.f32 %v127_v27, %v115_v24 }
  0xe8   :  { %v132_v34 = vadd.f32 %v130_v32, %v120_v25 }
  0xe9   :  { %v131_v31 = vadd.f32 %v129_v29, %v115_v24 }
  0xea   :  { %v134_v35 = vmul.f32 0.7978846, %v132_v34 }
  0xeb   :  { %v133_v33 = vmul.f32 0.7978846, %v131_v31 }
  0xed   :  { %360 = vtanh.f32 %v133_v33 }
  0xee   :  { %362 = vtanh.f32 %v134_v35 }
  0xf7   :  { %v361_v36 = vpop.eup %360 }
  0xf8   :  { %v137_v37 = vadd.f32 1.0, %v361_v36  ;;  %v363_v38 = vpop.eup %362 }
  0xf9   :  { %v138_v41 = vadd.f32 1.0, %v363_v38 }
  0xfa   :  { %v139_v40 = vmul.f32 %v137_v37, %v123_v39 }
  0xfb   :  { %v140_v45 = vmul.f32 %v138_v41, %v124_v44 }
 0x155   :  { %v144_v42 = vpop.permute.xlu0 %143 }
 0x156   :  { %v149_v43 = vmul.f32 %v144_v42, %v139_v40 }
 0x158   :  { %328 = vmatprep.mubr.msk.f32.mxu1 %vm161_vm1, %v149_v43 }
 0x159   :  { %v146_v46 = vpop.permute.xlu0 %145 }
 0x15a   :  { %v150_v47 = vmul.f32 %v146_v46, %v140_v45 }
 0x15c   :  { %329 = vmatmul.mubr.msk.f32.vlgmr.msra.gmra.mrb[0].mxu1 %vm161_vm1, %v150_v47 }
 0x22f   :  { %v330_v50 = vpop.f32.mrb[0].mxu1 }
 0x230   :  { %v244_v51 = vadd.f32 %v330_v50, %v152_v48  ;;  %v234_v52 = vpop.f32.mrb[1].mxu1 }
 0x231   :  { %v243_v53 = vadd.f32 %v234_v52, %v151_v49 }
 0x232   :  { %246 = vst.msk [vmem:[#allocation2 + $0x8] sm:$0xff] %vm25_vm0, %v244_v51 }
 0x233   :  { %245 = vst.msk [vmem:[#allocation2] sm:$0xff] %vm25_vm0, %v243_v53 }
 0x239   :  { %v251_v55 = vld [vmem:[#allocation2 + $0x8] sm:$0xff] }
 0x23a   :  { %v250_v56 = vld [vmem:[#allocation2] sm:$0xff]  ;;  %v260_v57 = vadd.f32 %v284_v54, %v251_v55 }
 0x23b   :  { %v259_v58 = vadd.f32 %v284_v54, %v250_v56 }
 0x23c   :  { %262 = vst.msk [vmem:[#allocation3 + $0x8] sm:$0xff] %vm25_vm0, %v260_v57 }
 0x23d   :  { %261 = vst.msk [vmem:[#allocation3] sm:$0xff] %vm25_vm0, %v259_v58 }
 0x23e   :  { %375 = shalt.err (!%p372_p4)
}
 0x23f   :  { %s376_s26 = scalar_lea.hbm %s496_s5, 256 }
 0x240   :  { %p377_p5 = scmp.ne.s32.totalorder %s496_s5, %s376_s26  ;;  %p380_p6 = scmp.lt.u32.totalorder %s376_s26, %s496_s5 }
 0x242   :  { %p382_p7 = pnand %p380_p6, %p377_p5 }
 0x244   :  { %385 = shalt.err (!%p382_p7)
}
 0x245   :  { %s391_s1 = smov 128   ;;  %s392_s6 = smov 8  }
 0x246   :  { %274 = dma.vmem_to_hbm [thread:$0]  %s269_s23, 256, %s496_s5, [#allocation4], %s391_s1, %s391_s1, %s392_s6  }
 0x247   :  { %386 = dma.done.wait [#allocation4], 256  }
 0x248   :  { %387 = vsyncadd [#allocation4], 4294967040 }
 0x249   :  { %278 = vsyncpa [#allocation4], 1 }

</bundles_post_ra>
